<compile_context>
chip_gen: v7x
topology: tpu7x:2x2x1
jax: 0.10.0
libtpu: 0.0.40
codegen_flags: <defaults>
</compile_context>

<pallas_src>
import functools

import jax
import jax.numpy as jnp
from jax.experimental import pallas as pl
from jax.experimental.pallas import tpu as pltpu

LANES = 128
SUBLANES = 8
MAX_BLOCK_BYTES = 2 * 1024 * 1024   # per input block; 2 in x 2 buf = 8 MiB VMEM
MAX_BLOCK_ROWS_CAP = 8192           # bounds f32 intermediates for narrow dtypes


def _cdiv(a: int, b: int) -> int:
    return -(-a // b)


def _num_tensorcores() -> int:
    """2 TensorCores per chip on v7x and v4/v5p megacore; 1 on v5e/v6e."""
    try:
        kind = jax.devices()[0].device_kind.lower().replace(" ", "")
    except Exception:
        return 1
    if any(tag in kind for tag in ("v7", "7x", "v4", "v5p")):
        return 2
    return 1


def _ssd_kernel(o_ref, c_ref, out_ref, acc_ref, *,
                blocks_per_shard: int, total_blocks: int,
                valid_rows: int, block_rows: int, num_shards: int):
    """Per-shard sum of squared differences into a single-vreg accumulator."""
    s = pl.program_id(0)   # shard axis ("parallel": split across TCs on 2-TC chips)
    j = pl.program_id(1)   # blocks within the shard ("arbitrary" reduction axis)
    blk = s * blocks_per_shard + j

    def block_sq():
        d = o_ref[...].astype(jnp.float32) - c_ref[...].astype(jnp.float32)
        return d * d

    if block_rows % SUBLANES != 0:
        # Only reachable when the whole (tiny) array fits in one block whose
        # row count isn't a multiple of 8: no accumulator / masking needed.
        out_ref[0, 0] = jnp.sum(block_sq())
        return

    @pl.when(j == 0)
    def _():
        acc_ref[...] = jnp.zeros_like(acc_ref)

    tail_ragged = (valid_rows % block_rows) != 0                  # static
    has_clamped = num_shards * blocks_per_shard > total_blocks    # static

    def accumulate():
        sq = block_sq()
        if not tail_ragged:
            # Steady state: tile-aligned reshape (free view) + VPU adds into
            # one (8, 128) vreg; no mask, no full-block RMW traffic.
            acc_ref[...] += jnp.sum(sq.reshape(-1, SUBLANES, LANES), axis=0)
        else:
            is_tail = blk == total_blocks - 1

            @pl.when(jnp.logical_not(is_tail))
            def _():
                acc_ref[...] += jnp.sum(sq.reshape(-1, SUBLANES, LANES), axis=0)

            @pl.when(is_tail)
            def _():
                # Ragged final block: rows past the end hold unspecified data
                # from the partial-tile DMA; mask them after the subtraction.
                row_idx = (jax.lax.broadcasted_iota(jnp.int32, sq.shape, 0)
                           + blk * block_rows)
                sq_m = jnp.where(row_idx < valid_rows, sq, 0.0)
                acc_ref[...] += jnp.sum(sq_m.reshape(-1, SUBLANES, LANES), axis=0)

    if has_clamped:
        # Duplicated (index-clamped) blocks on the short shard: skip all VPU work.
        @pl.when(blk < total_blocks)
        def _():
            accumulate()
    else:
        accumulate()

    @pl.when(j == pl.num_programs(1) - 1)
    def _():
        out_ref[0, 0] = jnp.sum(acc_ref[...])   # one-vreg XLU reduce per shard


def _finalize(ssd: jax.Array, n_elems: int) -> jax.Array:
    mse = ssd / jnp.float32(n_elems)
    psnr = 20.0 * jnp.log10(jnp.float32(255.0) / jnp.sqrt(mse))
    return jnp.where(mse == 0.0, jnp.float32(jnp.inf), 1.0 / psnr)


def psnr_loss(original_img: jax.Array, compressed_img: jax.Array, *,
              max_block_bytes: int = MAX_BLOCK_BYTES) -> jax.Array:
    """Pallas implementation of PSNRLoss.forward. Returns a scalar f32."""
    assert original_img.shape == compressed_img.shape
    n_elems = original_img.size

    # Keep the native dtype (bf16/u8/... stream at native width); widening to
    # f32 happens in-register inside the kernel.
    o = original_img.reshape(-1)
    c = compressed_img.reshape(-1)

    # Sub-128-element ragged tail: tiny plain-JAX sum instead of padding and
    # re-materializing both full arrays.  Common image shapes have
    # n_elems % 128 == 0, so this branch is usually dead and the (rows, 128)
    # view below is a zero-copy reshape.
    rem = n_elems % LANES
    if rem:
        main_elems = n_elems - rem
        tail_ssd = jnp.sum(
            (o[main_elems:].astype(jnp.float32)
             - c[main_elems:].astype(jnp.float32)) ** 2)
        if main_elems == 0:
            return _finalize(tail_ssd, n_elems)
        # TODO(synk): this prefix slice still materializes one copy of the main
        # body whenever n_elems % 128 != 0; unavoidable with a 2-D kernel view.
        o = jax.lax.slice(o, (0,), (main_elems,))
        c = jax.lax.slice(c, (0,), (main_elems,))
    else:
        main_elems = n_elems
        tail_ssd = jnp.float32(0.0)

    rows = main_elems // LANES
    o2 = o.reshape(rows, LANES)
    c2 = c.reshape(rows, LANES)

    itemsize = max(jnp.dtype(o2.dtype).itemsize, jnp.dtype(c2.dtype).itemsize)
    # Sublane packing of the narrower tile: 8 (f32), 16 (bf16), 32 (u8/i8).
    pack = SUBLANES * max(1, 4 // itemsize)
    max_rows = min(max_block_bytes // (LANES * itemsize), MAX_BLOCK_ROWS_CAP)
    max_rows = max((max_rows // pack) * pack, pack)

    # Single block uses the full (possibly non-8-multiple) row count, which is
    # always a legal block shape; multi-block uses a pack-aligned block.
    block_rows = rows if rows <= max_rows else max_rows

    total_blocks = _cdiv(rows, block_rows)
    num_shards = min(_num_tensorcores(), total_blocks)
    blocks_per_shard = _cdiv(total_blocks, num_shards)

    def in_map(s, j):
        # Clamp so the short shard never indexes past the end; the duplicated
        # clamped blocks are skipped (no compute) inside the kernel.
        return (jnp.minimum(s * blocks_per_shard + j, total_blocks - 1), 0)

    kernel = functools.partial(
        _ssd_kernel,
        blocks_per_shard=blocks_per_shard,
        total_blocks=total_blocks,
        valid_rows=rows,
        block_rows=block_rows,
        num_shards=num_shards,
    )

    bytes_in = rows * LANES * (jnp.dtype(o2.dtype).itemsize
                               + jnp.dtype(c2.dtype).itemsize)
    partials = pl.pallas_call(
        kernel,
        out_shape=jax.ShapeDtypeStruct((num_shards, 1), jnp.float32),
        grid_spec=pltpu.PrefetchScalarGridSpec(
            num_scalar_prefetch=0,
            grid=(num_shards, blocks_per_shard),
            in_specs=[
                pl.BlockSpec((block_rows, LANES), in_map),
                pl.BlockSpec((block_rows, LANES), in_map),
            ],
            out_specs=pl.BlockSpec(
                (1, 1), lambda s, j: (s, 0), memory_space=pltpu.SMEM),
            scratch_shapes=[pltpu.VMEM((SUBLANES, LANES), jnp.float32)],
        ),
        compiler_params=pltpu.CompilerParams(
            dimension_semantics=("parallel", "arbitrary"),
            vmem_limit_bytes=32 * 1024 * 1024,
        ),
        cost_estimate=pl.CostEstimate(
            flops=3 * rows * LANES,
            transcendentals=0,
            bytes_accessed=bytes_in + 4 * num_shards,
        ),
    )(o2, c2)

    # Tiny scalar finalize in plain JAX (combines per-core partials + tail).
    ssd = jnp.sum(partials) + tail_ssd
    return _finalize(ssd, n_elems)


def psnr_loss_ref(original_img, compressed_img):
    """Plain-JAX reference mirroring the PyTorch module."""
    o = original_img.astype(jnp.float32)
    c = compressed_img.astype(jnp.float32)
    mse = jnp.mean((o - c) ** 2)
    psnr = 20.0 * jnp.log10(255.0 / jnp.sqrt(mse))
    return jnp.where(mse == 0.0, jnp.float32(jnp.inf), 1.0 / psnr)


if __name__ == "__main__":
    key = jax.random.PRNGKey(0)
    k1, k2 = jax.random.split(key)

    # 1) Small NCHW image input (single-block path, n_elems % 1024 == 0).
    shape = (2, 4, 16, 16)
    original = jax.random.uniform(k1, shape, dtype=jnp.float32) * 255.0
    noise = jax.random.normal(k2, shape, dtype=jnp.float32) * 5.0
    compressed = jnp.clip(original + noise, 0.0, 255.0)

    loss = psnr_loss(original, compressed)
    jax.block_until_ready(loss)
    ref = psnr_loss_ref(original, compressed)
    assert jnp.allclose(loss, ref, rtol=1e-5, atol=1e-6), (loss, ref)

    # 2) Multi-block / ragged-final-block / shard path (small shape, block
    #    size overridden so the grid has >1 block without huge arrays).
    k3, k4 = jax.random.split(k2)
    shape2 = (2, 3, 64, 72)   # 27648 elems -> rows=216 -> 2 blocks of 128 rows
    original2 = jax.random.uniform(k3, shape2, dtype=jnp.float32) * 255.0
    noise2 = jax.random.normal(k4, shape2, dtype=jnp.float32) * 5.0
    compressed2 = jnp.clip(original2 + noise2, 0.0, 255.0)

    loss2 = psnr_loss(original2, compressed2, max_block_bytes=64 * 1024)
    jax.block_until_ready(loss2)
    ref2 = psnr_loss_ref(original2, compressed2)
    assert jnp.allclose(loss2, ref2, rtol=1e-5, atol=1e-6), (loss2, ref2)

    # 3) Non-128-multiple element count (plain-JAX tail + tiny single block).
    k5, k6 = jax.random.split(k4)
    shape3 = (2, 3, 50)       # 300 elems -> 256 in-kernel + 44-element tail
    original3 = jax.random.uniform(k5, shape3, dtype=jnp.float32) * 255.0
    noise3 = jax.random.normal(k6, shape3, dtype=jnp.float32) * 5.0
    compressed3 = jnp.clip(original3 + noise3, 0.0, 255.0)

    loss3 = psnr_loss(original3, compressed3)
    jax.block_until_ready(loss3)
    ref3 = psnr_loss_ref(original3, compressed3)
    assert jnp.allclose(loss3, ref3, rtol=1e-5, atol=1e-6), (loss3, ref3)

    print("KERNEL_OK")
</pallas_src>

<mosaic_0001>
module attributes {stable_mosaic.version = 11 : i64} {
  func.func @_ssd_kernel(%arg0: i32, %arg1: i32, %arg2: memref<16x128xf32, #tpu.memory_space<vmem>>, %arg3: memref<16x128xf32, #tpu.memory_space<vmem>>, %arg4: memref<1x1xf32, #tpu.memory_space<smem>>, %arg5: memref<8x128xf32, #tpu.memory_space<vmem>>) attributes {dimension_semantics = [#tpu.dimension_semantics<parallel>, #tpu.dimension_semantics<arbitrary>], iteration_bounds = array<i64: 1, 1>, scalar_prefetch = 0 : i64, scratch_operands = 1 : i64, tpu.core_type = #tpu.core_type<tc>, window_params = [{transform_indices = @transform_0, window_bounds = array<i64: 16, 128>}, {transform_indices = @transform_1, window_bounds = array<i64: 16, 128>}, {transform_indices = @transform_2, window_bounds = array<i64: 1, 1>}]} {
    %c0_i32 = arith.constant 0 : i32
    %0 = arith.cmpi eq, %arg1, %c0_i32 : i32
    %1 = arith.extui %0 : i1 to i32
    %c0_i32_0 = arith.constant 0 : i32
    %2 = arith.cmpi ne, %1, %c0_i32_0 : i32
    scf.if %2 {
      %cst_10 = arith.constant 0.000000e+00 : f32
      %15 = vector.broadcast %cst_10 : f32 to vector<8x128xf32>
      %c0_11 = arith.constant 0 : index
      %c0_12 = arith.constant 0 : index
      %16 = vector.load %arg5[%c0_11, %c0_12] : memref<8x128xf32, #tpu.memory_space<vmem>>, vector<8x128xf32>
      tpu.vector_store %arg5[%c0_11, %c0_12], %15 {strides = array<i32>} : memref<8x128xf32, #tpu.memory_space<vmem>>, vector<8x128xf32>,
    } else {
    }
    %c0 = arith.constant 0 : index
    %c0_1 = arith.constant 0 : index
    %3 = vector.load %arg2[%c0, %c0_1] : memref<16x128xf32, #tpu.memory_space<vmem>>, vector<16x128xf32>
    %c0_2 = arith.constant 0 : index
    %c0_3 = arith.constant 0 : index
    %4 = vector.load %arg3[%c0_2, %c0_3] : memref<16x128xf32, #tpu.memory_space<vmem>>, vector<16x128xf32>
    %5 = arith.subf %3, %4 : vector<16x128xf32>
    %6 = arith.mulf %5, %5 : vector<16x128xf32>
    %c0_4 = arith.constant 0 : index
    %c0_5 = arith.constant 0 : index
    %7 = vector.load %arg5[%c0_4, %c0_5] : memref<8x128xf32, #tpu.memory_space<vmem>>, vector<8x128xf32>
    %8 = vector.shape_cast %6 : vector<16x128xf32> to vector<2x8x128xf32>
    %cst = arith.constant dense<0.000000e+00> : vector<8x128xf32>
    %9 = vector.multi_reduction <add>, %8, %cst [0] : vector<2x8x128xf32> to vector<8x128xf32>
    %10 = arith.addf %7, %9 : vector<8x128xf32>
    %c0_6 = arith.constant 0 : index
    %c0_7 = arith.constant 0 : index
    %11 = vector.load %arg5[%c0_6, %c0_7] : memref<8x128xf32, #tpu.memory_space<vmem>>, vector<8x128xf32>
    tpu.vector_store %arg5[%c0_6, %c0_7], %10 {strides = array<i32>} : memref<8x128xf32, #tpu.memory_space<vmem>>, vector<8x128xf32>,
    %c0_i32_8 = arith.constant 0 : i32
    %12 = arith.cmpi eq, %arg1, %c0_i32_8 : i32
    %13 = arith.extui %12 : i1 to i32
    %c0_i32_9 = arith.constant 0 : i32
    %14 = arith.cmpi ne, %13, %c0_i32_9 : i32
    scf.if %14 {
      %c0_10 = arith.constant 0 : index
      %c0_11 = arith.constant 0 : index
      %15 = vector.load %arg5[%c0_10, %c0_11] : memref<8x128xf32, #tpu.memory_space<vmem>>, vector<8x128xf32>
      %16 = vector.shape_cast %15 : vector<8x128xf32> to vector<1x8x128xf32>
      %cst_12 = arith.constant dense<0.000000e+00> : vector<1xf32>
      %17 = vector.multi_reduction <add>, %16, %cst_12 [1, 2] : vector<1x8x128xf32> to vector<1xf32>
      %18 = vector.shape_cast %17 : vector<1xf32> to vector<1x1x1xf32>
      %19 = vector.extract %18[0, 0, 0] : f32 from vector<1x1x1xf32>
      %c0_13 = arith.constant 0 : index
      %c0_14 = arith.constant 0 : index
      %20 = memref.load %arg4[%c0_13, %c0_14] : memref<1x1xf32, #tpu.memory_space<smem>>
      memref.store %19, %arg4[%c0_13, %c0_14] : memref<1x1xf32, #tpu.memory_space<smem>>
    } else {
    }
    return
  }
  func.func @transform_0(%arg0: i32, %arg1: i32) -> (i32, i32) {
    %c1_i32 = arith.constant 1 : i32
    %0 = arith.muli %arg0, %c1_i32 : i32
    %1 = arith.addi %0, %arg1 : i32
    %c0_i32 = arith.constant 0 : i32
    %2 = arith.minsi %1, %c0_i32 : i32
    %c0_i32_0 = arith.constant 0 : i32
    %c0_i32_1 = arith.constant 0 : i32
    return %2, %c0_i32_0 : i32, i32
  }
  func.func @transform_1(%arg0: i32, %arg1: i32) -> (i32, i32) {
    %c1_i32 = arith.constant 1 : i32
    %0 = arith.muli %arg0, %c1_i32 : i32
    %1 = arith.addi %0, %arg1 : i32
    %c0_i32 = arith.constant 0 : i32
    %2 = arith.minsi %1, %c0_i32 : i32
    %c0_i32_0 = arith.constant 0 : i32
    %c0_i32_1 = arith.constant 0 : i32
    return %2, %c0_i32_0 : i32, i32
  }
  func.func @transform_2(%arg0: i32, %arg1: i32) -> (i32, i32) {
    %c0_i32 = arith.constant 0 : i32
    %c0_i32_0 = arith.constant 0 : i32
    return %arg0, %c0_i32 : i32, i32
  }
}

</mosaic_0001>

<bundles_post_ra>
// kernel: tpu_custom_call.1
= control target key start
LH: loop header
LB: loop body
LE: loop exit
PB: predicated region body
PF: predicated region fallthrough
CT: control target
= control target key end

     0   :  { %7 = vsyncpa [#allocation4], 0  ;;  %s234_s0 = inlined_call_operand.hbm [shape: f32[16,128], index: 0, kind: input, shape index: {}]   ;;  %s235_s1 = inlined_call_operand.hbm [shape: f32[16,128], index: 1, kind: input, shape index: {}]   ;;  %s236_s2 = inlined_call_operand.hbm [shape: f32[1,1], index: 2, kind: output, shape index: {}]  }
   0x1   :  { %8 = vsyncpa [#allocation7], 0 }
   0x2   :  { %9 = vsyncpa [#allocation5], 0  ;;  %s178_s9 = smov [#allocation3]   ;;  %s118_s13 = scalar_lea.hbm %s234_s0, 256 }
   0x3   :  { %s21_s10 = sshll.u32 %s178_s9, 4  ;;  %p119_p0 = scmp.ne.s32.totalorder %s234_s0, %s118_s13  ;;  %s22_s10 = int_to_ptr.vmem [resolvable:$true] %s21_s10 }
   0x4   :  { %p122_p1 = scmp.lt.u32.totalorder %s118_s13, %s234_s0 }
   0x6   :  { %p124_p2 = pnand %p122_p1, %p119_p0 }
   0x8   :  { %127 = shalt.err (!%p124_p2)
}
   0x9   :  { %s128_s18 = scalar_lea.vmem %s22_s10, 256  ;;  %p133_p4 = scmp.lt.s32.totalorder %s22_s10, %s22_s10 }
   0xa   :  { %p129_p3 = scmp.ne.s32.totalorder %s22_s10, %s128_s18  ;;  %p134_p5 = scmp.lt.s32.totalorder %s128_s18, %s128_s18 }
   0xc   :  { %p135_p6 = por %p134_p5, %p133_p4 }
   0xe   :  { %p136_p7 = pnand %p135_p6, %p129_p3 }
  0x10   :  { %139 = shalt.err (!%p136_p7)
}
  0x11   :  { %s179_s19 = smov 128   ;;  %s180_s20 = smov 8  }
  0x12   :  { %27 = dma.hbm_to_vmem [thread:$0]  %s234_s0, 256, %s22_s10, [#allocation4], %s179_s19, %s179_s19, %s180_s20  }
  0x13   :  { %s181_s23 = smov [#allocation6]   ;;  %s140_s27 = scalar_lea.hbm %s235_s1, 256 }
  0x14   :  { %s39_s24 = sshll.u32 %s181_s23, 4  ;;  %p141_p8 = scmp.ne.s32.totalorder %s235_s1, %s140_s27  ;;  %s40_s24 = int_to_ptr.vmem [resolvable:$true] %s39_s24 }
  0x15   :  { %p144_p9 = scmp.lt.u32.totalorder %s140_s27, %s235_s1 }
  0x17   :  { %p146_p10 = pnand %p144_p9, %p141_p8 }
  0x19   :  { %149 = shalt.err (!%p146_p10)
}
  0x1a   :  { %s150_s4 = scalar_lea.vmem %s40_s24, 256  ;;  %p155_p12 = scmp.lt.s32.totalorder %s40_s24, %s40_s24 }
  0x1b   :  { %p151_p11 = scmp.ne.s32.totalorder %s40_s24, %s150_s4  ;;  %p156_p13 = scmp.lt.s32.totalorder %s150_s4, %s150_s4 }
  0x1d   :  { %p157_p0 = por %p156_p13, %p155_p12 }
  0x1f   :  { %p158_p1 = pnand %p157_p0, %p151_p11 }
  0x21   :  { %161 = shalt.err (!%p158_p1)
}
  0x22   :  { %45 = dma.hbm_to_vmem [thread:$0]  %s235_s1, 256, %s40_s24, [#allocation7], %s179_s19, %s179_s19, %s180_s20  }
  0x23   :  { %172 = dma.done.wait [#allocation4], 256  }
  0x24   :  { %173 = vsyncadd [#allocation4], 4294967040 }
  0x25   :  { %174 = dma.done.wait [#allocation7], 256  }
  0x26   :  { %175 = vsyncadd [#allocation7], 4294967040  ;;  %v65_v0 = vld [vmem:[#allocation3] sm:$0xff]  ;;  %v66_v1 = vld [vmem:[#allocation3 + $0x8] sm:$0xff]  ;;  %s162_s8 = scalar_lea.hbm %s236_s2, 16 }
  0x27   :  { %v67_v2 = vld [vmem:[#allocation6] sm:$0xff]  ;;  %v68_v3 = vld [vmem:[#allocation6 + $0x8] sm:$0xff]  ;;  %p163_p2 = scmp.ne.s32.totalorder %s236_s2, %s162_s8  ;;  %p166_p3 = scmp.lt.u32.totalorder %s162_s8, %s236_s2 }
  0x28   :  { %v69_v4 = vsub.f32 %v65_v0, %v67_v2  ;;  %v70_v5 = vsub.f32 %v66_v1, %v68_v3 }
  0x29   :  { %p168_p4 = pnand %p166_p3, %p163_p2 }
  0x2a   :  { %v71_v6 = vmul.f32 %v69_v4, %v69_v4  ;;  %v72_v7 = vmul.f32 %v70_v5, %v70_v5 }
  0x2c   :  { %v74_v8 = vadd.f32 %v72_v7, %v71_v6 }
  0x2e   :  { %81 = vadd.xlane.f32.xlu0 %v74_v8 }
  0xbb   :  { %v82_v9 = vpop.xlane.xlu0 %81 }
  0xbc   :  { %v83_v10 = vrot.slane %v82_v9, 4 }
  0xbe   :  { %v84_v11 = vadd.f32 %v83_v10, %v82_v9 }
  0xc0   :  { %v85_v12 = vrot.slane %v84_v11, 2 }
  0xc2   :  { %v86_v13 = vadd.f32 %v85_v12, %v84_v11 }
  0xc4   :  { %v87_v14 = vrot.slane %v86_v13, 1 }
  0xc6   :  { %v88_v15 = vadd.f32 %v87_v14, %v86_v13 }
  0xc8   :  { %111 = vpush %v88_v15 }
  0xf9   :  { %s112_s1 = spop %111 }
  0xfa   :  { %91 = sst [smem:[#allocation8]] %s112_s1 }
  0xfb   :  { %171 = shalt.err (!%p168_p4)
}
  0xfc   :  { %s182_s13 = smov [#allocation8]  }
  0xfd   :  { %99 = dma.smem_to_hbm %s182_s13, 16, %s236_s2, [#allocation5]  }
  0xfe   :  { %176 = dma.done.wait [#allocation5], 16  }
  0xff   :  { %177 = vsyncadd [#allocation5], 4294967280 }
 0x100   :  { %103 = sfence }
 0x101   :  { %104 = vsyncpa [#allocation4], 1 }
 0x102   :  { %105 = vsyncpa [#allocation7], 1 }
 0x103   :  { %106 = vsyncpa [#allocation5], 1 }

</bundles_post_ra>
